<compile_context>
chip_gen: v7x
topology: tpu7x:2x2x1
jax: 0.10.0
libtpu: 0.0.40
codegen_flags: <defaults>
</compile_context>

<pallas_src>
import math
import functools

import numpy as np
import jax
import jax.numpy as jnp
from jax import lax
from jax.experimental import pallas as pl
from jax.experimental.pallas import tpu as pltpu


def adaptive_kernel_size(channels: int) -> int:
    k = math.ceil((math.log2(channels) + 1) / 2)
    return k if k % 2 == 1 else k + 1


def _ca_kernel(hw_total, band_ref, x_ref, o_ref, sum_acc, max_acc):
    # band_ref: (C, C)            f32 VMEM, band[c_in, c_out] = w[c_in - c_out + pad]
    # x_ref:    (b_tile, C, t_hw) VMEM (native dtype); HW on lanes, C on sublanes
    # o_ref:    (b_tile, 1, C)    output block (lane-dense)
    # sum_acc / max_acc: (b_tile, C, 1) f32 scratch, persistent across the HW axis
    h = pl.program_id(1)
    nh = pl.num_programs(1)
    b_tile, C, t_hw = x_ref.shape

    @pl.when(h == 0)
    def _():
        sum_acc[...] = jnp.zeros(sum_acc.shape, jnp.float32)
        max_acc[...] = jnp.full(max_acc.shape, -jnp.inf, jnp.float32)

    def accumulate(xb_s, xb_m):
        # Vectorized over the whole block (no per-batch Python unroll).
        sum_acc[...] += jnp.sum(xb_s, axis=-1, keepdims=True)
        max_acc[...] = jnp.maximum(max_acc[...],
                                   jnp.max(xb_m, axis=-1, keepdims=True))

    need_mask = (hw_total % t_hw) != 0          # static Python bool
    if need_mask:
        # Pay for masking only on the last (ragged) HW tile.
        @pl.when(h < nh - 1)
        def _():
            xb = x_ref[...].astype(jnp.float32)
            accumulate(xb, xb)

        @pl.when(h == nh - 1)
        def _():
            xb = x_ref[...].astype(jnp.float32)
            lane = lax.broadcasted_iota(jnp.int32, (1, 1, t_hw), 2)
            valid = (h * t_hw + lane) < hw_total
            accumulate(jnp.where(valid, xb, 0.0),
                       jnp.where(valid, xb, -jnp.inf))
    else:
        xb = x_ref[...].astype(jnp.float32)
        accumulate(xb, xb)

    @pl.when(h == nh - 1)
    def _():
        band = band_ref[...]                    # (C, C)
        inv_hw = 1.0 / hw_total
        for bi in range(b_tile):                # finalize only (runs once per batch step)
            avg = sum_acc[bi] * inv_hw          # (C, 1)
            mx = max_acc[bi]                    # (C, 1)
            # conv1d over channels + sublane->lane relayout in one
            # broadcast-multiply-reduce: out[0, c] = sum_ci band[ci, c] * v[ci].
            a = jnp.sum(band * avg, axis=0, keepdims=True)   # (1, C)
            m = jnp.sum(band * mx, axis=0, keepdims=True)    # (1, C)
            out = jax.nn.sigmoid(jax.nn.sigmoid(a) + jax.nn.sigmoid(m))
            o_ref[bi] = out.astype(o_ref.dtype)


def _largest_divisor_leq(n, cap):
    cap = max(1, min(int(cap), n))
    for d in range(cap, 0, -1):
        if n % d == 0:
            return d
    return 1


def _vmem_budgets():
    """Generation-aware (per-buffer budget, vmem limit base, vmem limit cap)."""
    vmem_cap = 128 * 1024 * 1024
    try:
        vmem_cap = int(pltpu.get_tpu_info().vmem_capacity_bytes)
    except Exception:
        pass
    if vmem_cap <= 64 * 1024 * 1024:            # v7x-class: 64 MiB physical VMEM
        return 4 * 1024 * 1024, 32 * 1024 * 1024, 52 * 1024 * 1024
    # v5e / v6e: 128 MiB physical VMEM -> deeper tiles, fewer grid steps.
    return 12 * 1024 * 1024, 64 * 1024 * 1024, 100 * 1024 * 1024


def channel_attention(x, w):
    """x: (B, C, H, W) (NCHW, matching PyTorch); w: (K,) conv1d taps (no bias)."""
    B, C, H, W = x.shape
    HW = H * W
    K = int(w.shape[0])
    pad = K // 2

    # Free (metadata-only) view of the NCHW tensor: (B, C, HW). No extra HBM
    # pass; the cast to f32 happens inside the kernel after the DMA.
    x3 = x.reshape(B, C, HW)
    elt = x3.dtype.itemsize

    # Banded conv1d matrix (built once): band[c_in, c_out] = w[c_in - c_out + pad].
    # TODO(synk): for very large C (>= ~2048) replace the dense (C, C) band with
    # K pltpu.roll taps (O(K*C)) to avoid the O(C^2) VMEM / finalize cost.
    ci = jnp.arange(C)[:, None]
    co = jnp.arange(C)[None, :]
    tap = ci - co + pad
    band = jnp.where((tap >= 0) & (tap < K),
                     w.astype(jnp.float32)[jnp.clip(tap, 0, K - 1)],
                     0.0)

    LANE = 128
    budget, limit_base, limit_cap = _vmem_budgets()
    band_bytes = 2 * C * C * 4                  # band is double-buffered f32
    x_budget = max(1024 * 1024, budget - band_bytes)

    per_batch = C * HW * elt
    if per_batch <= x_budget:
        # Whole feature maps fit: pack several batches per grid step to
        # amortize the fixed per-step cost.
        cap = min(B, max(1, x_budget // per_batch))
        if B >= 2:
            # Keep the "parallel" batch axis at >= 2 grid steps so both
            # TensorCores on multi-core chips (v7x) stream HBM.
            cap = min(cap, max(1, B // 2))
        b_tile = _largest_divisor_leq(B, cap)   # exact divisor -> no dropped batches
        t_hw = HW
    else:
        # One batch per step, tile HW on lanes (multiple of 128, or full extent).
        b_tile = 1
        lanes_fit = (x_budget // (C * elt)) // LANE * LANE
        t_hw = max(LANE, lanes_fit)
        if t_hw >= HW:
            t_hw = HW
    nb = B // b_tile
    nh = pl.cdiv(HW, t_hw)
    # TODO(synk): when B == 1 and HW is huge, split the HW reduction over a
    # leading parallel axis (per-core partials + combine) so v7x's 2nd core helps.

    kernel = functools.partial(_ca_kernel, HW)

    cost = pl.CostEstimate(
        flops=2 * B * C * HW + 4 * B * C * C,
        transcendentals=3 * B * C,
        bytes_accessed=B * C * HW * elt + C * C * 4 + B * C * elt,
    )

    out = pl.pallas_call(
        kernel,
        out_shape=jax.ShapeDtypeStruct((B, 1, C), x.dtype),
        grid_spec=pltpu.PrefetchScalarGridSpec(
            num_scalar_prefetch=0,
            grid=(nb, nh),
            in_specs=[
                pl.BlockSpec((C, C), lambda b, h: (0, 0)),                # band (resident)
                pl.BlockSpec((b_tile, C, t_hw), lambda b, h: (b, 0, h)),  # x tile
            ],
            out_specs=pl.BlockSpec((b_tile, 1, C), lambda b, h: (b, 0, 0)),
            scratch_shapes=[
                pltpu.VMEM((b_tile, C, 1), jnp.float32),   # running sum
                pltpu.VMEM((b_tile, C, 1), jnp.float32),   # running max
            ],
        ),
        compiler_params=pltpu.CompilerParams(
            dimension_semantics=("parallel", "arbitrary"),
            vmem_limit_bytes=min(limit_cap, limit_base + band_bytes),
        ),
        cost_estimate=cost,
    )(band, x3)

    # Match PyTorch output shape (B, C, 1, 1).
    return out.reshape(B, C, 1, 1)


def channel_attention_ref(x, w):
    """Pure-JAX reference mirroring the PyTorch forward."""
    B, C, H, W = x.shape
    K = w.shape[0]
    pad = K // 2
    avg = x.mean(axis=(2, 3))  # (B, C)
    mx = x.max(axis=(2, 3))    # (B, C)

    def conv1d(v):
        vp = jnp.pad(v, ((0, 0), (pad, pad)))
        out = jnp.zeros_like(v)
        for j in range(K):
            out = out + w[j] * vp[:, j:j + C]
        return out

    a = jax.nn.sigmoid(conv1d(avg))
    m = jax.nn.sigmoid(conv1d(mx))
    return jax.nn.sigmoid(a + m).reshape(B, C, 1, 1)


if __name__ == "__main__":
    B, C, H, W = 2, 4, 16, 16
    K = adaptive_kernel_size(C)  # channels=4 -> kernel_size=3, padding=1

    key = jax.random.PRNGKey(0)
    kx, kw = jax.random.split(key)
    x = jax.random.normal(kx, (B, C, H, W), dtype=jnp.float32)

    # Deterministic conv1d weight init (PyTorch default: U(-1/sqrt(fan_in), +)).
    bound = 1.0 / math.sqrt(1 * K)
    w = jax.random.uniform(kw, (K,), dtype=jnp.float32,
                           minval=-bound, maxval=bound)

    out = channel_attention(x, w)
    out = jax.block_until_ready(out)

    ref = channel_attention_ref(x, w)
    np.testing.assert_allclose(np.asarray(out), np.asarray(ref),
                               rtol=1e-5, atol=1e-5)
    assert out.shape == (B, C, 1, 1)
    print("KERNEL_OK")
</pallas_src>

<mosaic_0001>
module attributes {stable_mosaic.version = 11 : i64} {
  func.func @_ca_kernel(%arg0: i32, %arg1: i32, %arg2: memref<4x4xf32, #tpu.memory_space<vmem>>, %arg3: memref<1x4x256xf32, #tpu.memory_space<vmem>>, %arg4: memref<1x1x4xf32, #tpu.memory_space<vmem>>, %arg5: memref<1x4x1xf32, #tpu.memory_space<vmem>>, %arg6: memref<1x4x1xf32, #tpu.memory_space<vmem>>) attributes {dimension_semantics = [#tpu.dimension_semantics<parallel>, #tpu.dimension_semantics<arbitrary>], iteration_bounds = array<i64: 2, 1>, scalar_prefetch = 0 : i64, scratch_operands = 2 : i64, tpu.core_type = #tpu.core_type<tc>, window_params = [{pipeline_mode = #tpu.pipeline_mode<synchronous>, transform_indices = @transform_0, window_bounds = array<i64: 4, 4>}, {transform_indices = @transform_1, window_bounds = array<i64: 1, 4, 256>}, {transform_indices = @transform_2, window_bounds = array<i64: 1, 1, 4>}]} {
    %c0_i32 = arith.constant 0 : i32
    %0 = arith.cmpi eq, %arg1, %c0_i32 : i32
    %1 = arith.extui %0 : i1 to i32
    %c0_i32_0 = arith.constant 0 : i32
    %2 = arith.cmpi ne, %1, %c0_i32_0 : i32
    scf.if %2 {
      %cst_18 = arith.constant 0.000000e+00 : f32
      %17 = vector.broadcast %cst_18 : f32 to vector<1x4x1xf32>
      %c0_19 = arith.constant 0 : index
      %c0_20 = arith.constant 0 : index
      %c0_21 = arith.constant 0 : index
      %18 = vector.load %arg5[%c0_19, %c0_20, %c0_21] : memref<1x4x1xf32, #tpu.memory_space<vmem>>, vector<1x4x1xf32>
      tpu.vector_store %arg5[%c0_19, %c0_20, %c0_21], %17 {strides = array<i32>} : memref<1x4x1xf32, #tpu.memory_space<vmem>>, vector<1x4x1xf32>,
      %cst_22 = arith.constant 0xFF800000 : f32
      %19 = vector.broadcast %cst_22 : f32 to vector<1x4x1xf32>
      %c0_23 = arith.constant 0 : index
      %c0_24 = arith.constant 0 : index
      %c0_25 = arith.constant 0 : index
      %20 = vector.load %arg6[%c0_23, %c0_24, %c0_25] : memref<1x4x1xf32, #tpu.memory_space<vmem>>, vector<1x4x1xf32>
      tpu.vector_store %arg6[%c0_23, %c0_24, %c0_25], %19 {strides = array<i32>} : memref<1x4x1xf32, #tpu.memory_space<vmem>>, vector<1x4x1xf32>,
    } else {
    }
    %c0 = arith.constant 0 : index
    %c0_1 = arith.constant 0 : index
    %c0_2 = arith.constant 0 : index
    %3 = vector.load %arg3[%c0, %c0_1, %c0_2] : memref<1x4x256xf32, #tpu.memory_space<vmem>>, vector<1x4x256xf32>
    %c0_3 = arith.constant 0 : index
    %c0_4 = arith.constant 0 : index
    %c0_5 = arith.constant 0 : index
    %4 = vector.load %arg5[%c0_3, %c0_4, %c0_5] : memref<1x4x1xf32, #tpu.memory_space<vmem>>, vector<1x4x1xf32>
    %cst = arith.constant dense<0.000000e+00> : vector<1x4xf32>
    %5 = vector.multi_reduction <add>, %3, %cst [2] : vector<1x4x256xf32> to vector<1x4xf32>
    %6 = vector.shape_cast %5 : vector<1x4xf32> to vector<1x4x1xf32>
    %7 = arith.addf %4, %6 : vector<1x4x1xf32>
    %c0_6 = arith.constant 0 : index
    %c0_7 = arith.constant 0 : index
    %c0_8 = arith.constant 0 : index
    %8 = vector.load %arg5[%c0_6, %c0_7, %c0_8] : memref<1x4x1xf32, #tpu.memory_space<vmem>>, vector<1x4x1xf32>
    tpu.vector_store %arg5[%c0_6, %c0_7, %c0_8], %7 {strides = array<i32>} : memref<1x4x1xf32, #tpu.memory_space<vmem>>, vector<1x4x1xf32>,
    %c0_9 = arith.constant 0 : index
    %c0_10 = arith.constant 0 : index
    %c0_11 = arith.constant 0 : index
    %9 = vector.load %arg6[%c0_9, %c0_10, %c0_11] : memref<1x4x1xf32, #tpu.memory_space<vmem>>, vector<1x4x1xf32>
    %cst_12 = arith.constant dense<0xFF800000> : vector<1x4xf32>
    %10 = vector.multi_reduction <maximumf>, %3, %cst_12 [2] : vector<1x4x256xf32> to vector<1x4xf32>
    %11 = vector.shape_cast %10 : vector<1x4xf32> to vector<1x4x1xf32>
    %12 = arith.maximumf %9, %11 : vector<1x4x1xf32>
    %c0_13 = arith.constant 0 : index
    %c0_14 = arith.constant 0 : index
    %c0_15 = arith.constant 0 : index
    %13 = vector.load %arg6[%c0_13, %c0_14, %c0_15] : memref<1x4x1xf32, #tpu.memory_space<vmem>>, vector<1x4x1xf32>
    tpu.vector_store %arg6[%c0_13, %c0_14, %c0_15], %12 {strides = array<i32>} : memref<1x4x1xf32, #tpu.memory_space<vmem>>, vector<1x4x1xf32>,
    %c0_i32_16 = arith.constant 0 : i32
    %14 = arith.cmpi eq, %arg1, %c0_i32_16 : i32
    %15 = arith.extui %14 : i1 to i32
    %c0_i32_17 = arith.constant 0 : i32
    %16 = arith.cmpi ne, %15, %c0_i32_17 : i32
    scf.if %16 {
      %c0_18 = arith.constant 0 : index
      %c0_19 = arith.constant 0 : index
      %17 = vector.load %arg2[%c0_18, %c0_19] : memref<4x4xf32, #tpu.memory_space<vmem>>, vector<4x4xf32>
      %c0_20 = arith.constant 0 : index
      %c0_21 = arith.constant 0 : index
      %c0_22 = arith.constant 0 : index
      %18 = vector.load %arg5[%c0_20, %c0_21, %c0_22] : memref<1x4x1xf32, #tpu.memory_space<vmem>>, vector<1x4x1xf32>
      %19 = vector.shape_cast %18 : vector<1x4x1xf32> to vector<4x1xf32>
      %cst_23 = arith.constant 3.906250e-03 : f32
      %20 = vector.broadcast %cst_23 : f32 to vector<4x1xf32>
      %21 = arith.mulf %19, %20 : vector<4x1xf32>
      %c0_24 = arith.constant 0 : index
      %c0_25 = arith.constant 0 : index
      %c0_26 = arith.constant 0 : index
      %22 = vector.load %arg6[%c0_24, %c0_25, %c0_26] : memref<1x4x1xf32, #tpu.memory_space<vmem>>, vector<1x4x1xf32>
      %23 = vector.shape_cast %22 : vector<1x4x1xf32> to vector<4x1xf32>
      %24 = vector.broadcast %21 : vector<4x1xf32> to vector<4x4xf32>
      %25 = arith.mulf %17, %24 : vector<4x4xf32>
      %cst_27 = arith.constant dense<0.000000e+00> : vector<4xf32>
      %26 = vector.multi_reduction <add>, %25, %cst_27 [0] : vector<4x4xf32> to vector<4xf32>
      %27 = vector.shape_cast %26 : vector<4xf32> to vector<1x4xf32>
      %28 = vector.broadcast %23 : vector<4x1xf32> to vector<4x4xf32>
      %29 = arith.mulf %17, %28 : vector<4x4xf32>
      %cst_28 = arith.constant dense<0.000000e+00> : vector<4xf32>
      %30 = vector.multi_reduction <add>, %29, %cst_28 [0] : vector<4x4xf32> to vector<4xf32>
      %31 = vector.shape_cast %30 : vector<4xf32> to vector<1x4xf32>
      %32 = arith.negf %27 : vector<1x4xf32>
      %33 = math.exp %32 : vector<1x4xf32>
      %cst_29 = arith.constant 1.000000e+00 : f32
      %34 = vector.broadcast %cst_29 : f32 to vector<1x4xf32>
      %35 = arith.addf %34, %33 : vector<1x4xf32>
      %36 = arith.divf %34, %35 : vector<1x4xf32>
      %37 = arith.negf %31 : vector<1x4xf32>
      %38 = math.exp %37 : vector<1x4xf32>
      %cst_30 = arith.constant 1.000000e+00 : f32
      %39 = vector.broadcast %cst_30 : f32 to vector<1x4xf32>
      %40 = arith.addf %39, %38 : vector<1x4xf32>
      %41 = arith.divf %39, %40 : vector<1x4xf32>
      %42 = arith.addf %36, %41 : vector<1x4xf32>
      %43 = arith.negf %42 : vector<1x4xf32>
      %44 = math.exp %43 : vector<1x4xf32>
      %cst_31 = arith.constant 1.000000e+00 : f32
      %45 = vector.broadcast %cst_31 : f32 to vector<1x4xf32>
      %46 = arith.addf %45, %44 : vector<1x4xf32>
      %47 = arith.divf %45, %46 : vector<1x4xf32>
      %c0_32 = arith.constant 0 : index
      %c0_33 = arith.constant 0 : index
      %c0_34 = arith.constant 0 : index
      %48 = vector.load %arg4[%c0_32, %c0_33, %c0_34] : memref<1x1x4xf32, #tpu.memory_space<vmem>>, vector<1x1x4xf32>
      %49 = vector.shape_cast %48 : vector<1x1x4xf32> to vector<1x4xf32>
      %50 = vector.shape_cast %47 : vector<1x4xf32> to vector<1x1x4xf32>
      tpu.vector_store %arg4[%c0_32, %c0_33, %c0_34], %50 {strides = array<i32>} : memref<1x1x4xf32, #tpu.memory_space<vmem>>, vector<1x1x4xf32>,
    } else {
    }
    return
  }
  func.func @transform_0(%arg0: i32, %arg1: i32) -> (i32, i32) {
    %c0_i32 = arith.constant 0 : i32
    %c0_i32_0 = arith.constant 0 : i32
    %c0_i32_1 = arith.constant 0 : i32
    return %c0_i32, %c0_i32_0 : i32, i32
  }
  func.func @transform_1(%arg0: i32, %arg1: i32) -> (i32, i32, i32) {
    %c0_i32 = arith.constant 0 : i32
    %c0_i32_0 = arith.constant 0 : i32
    return %arg0, %c0_i32, %arg1 : i32, i32, i32
  }
  func.func @transform_2(%arg0: i32, %arg1: i32) -> (i32, i32, i32) {
    %c0_i32 = arith.constant 0 : i32
    %c0_i32_0 = arith.constant 0 : i32
    %c0_i32_1 = arith.constant 0 : i32
    return %arg0, %c0_i32, %c0_i32_0 : i32, i32, i32
  }
}

</mosaic_0001>

<bundles_post_ra>
// kernel: tpu_custom_call.1
= control target key start
LH: loop header
LB: loop body
LE: loop exit
PB: predicated region body
PF: predicated region fallthrough
CT: control target
= control target key end

     0   :  { %7 = vsyncpa [#allocation5], 0  ;;  %s872_s0 = inlined_call_operand.hbm [shape: f32[4,4], index: 0, kind: input, shape index: {}]   ;;  %s873_s1 = inlined_call_operand.hbm [shape: f32[2,4,256], index: 1, kind: input, shape index: {}]   ;;  %s874_s2 = inlined_call_operand.hbm [shape: f32[2,1,4], index: 2, kind: output, shape index: {}]  }
   0x1   :  { %8 = vsyncpa [#allocation8], 0 }
   0x2   :  { %10 = vsyncpa [#allocation8 + $0x1], 0 }
   0x3   :  { %11 = vsyncpa [#allocation6], 0 }
   0x4   :  { %13 = vsyncpa [#allocation6 + $0x1], 0  ;;  %s651_s9 = smov 0   ;;  %s653_s10 = smov 0  }
   0x5   :  { %s655_s11 = smov 0   ;;  %s657_s12 = smov 0  }
   0x6   :  { %s659_s13 = smov 0   ;;  %s661_s14 = smov 0  }
   0x7 LB: > { %s375_s15 = sadd.s32 4294967295, %s628_s14   ;;  %s376_s16 = sadd.s32 4294967294, %s628_s14   ;;  %s628_s14 = sphi %s661_s14, %s19_s14   ;;  %s624_s13 = sphi %s659_s13, %s899_s13   ;;  %s620_s12 = sphi %s657_s12, %s898_s12   ;;  %s616_s11 = sphi %s655_s11, %s897_s11   ;;  %s612_s10 = sphi %s653_s10, %s896_s10   ;;  %s608_s9 = sphi %s651_s9, %s895_s9  }
   0x8   : > { %p74_p0 = scmp.ne.s32.totalorder %s612_s10, %s608_s9  ;;  %p685_p1 = scmp.eq.s32.totalorder %s375_s15, 0 }
   0x9   : > { %p689_p2 = scmp.eq.s32.totalorder %s375_s15, 1  ;;  %p104_p3 = scmp.eq.s32.totalorder %s376_s16, 1 }
   0xa   : > { %s879_s17 = scalar_select %p685_p1, 1, 0 }
   0xb   : > { %s880_s18 = scalar_select %p689_p2, 1, 0 }
   0xc   : > { %p695_p4 = por %p685_p1, %p74_p0  ;;  %p377_p5 = scmp.ge.s32.totalorder %s628_s14, 1 }
   0xd   : > { %p700_p6 = por %p104_p3, %p74_p0  ;;  %p111_p7 = scmp.lt.s32.totalorder %s628_s14, 3 }
   0xe   : > { %s881_s19 = scalar_select %p695_p4, 1, 0 }
   0xf   : > { %s882_s20 = scalar_select %p700_p6, 1, 0 }
  0x10   : > { %p705_p8 = pnand %p377_p5, %p111_p7  ;;  %s630_s22 = smov [#allocation4]  }
  0x11   : > { %s124_s23 = sshll.u32 %s630_s22, 4  ;;  %s31_s25 = sadd.s32 1, %s624_s13  ;;  %s125_s23 = int_to_ptr.vmem [resolvable:$true] %s124_s23 }
  0x12   : > { %s883_s21 = scalar_select %p705_p8, 1, 0 }
  0x13   : > { %p401_p10 = pneg %p705_p8  ;;  %s61_s26 = sadd.s32 1, %s616_s11 }
  0x14   : > { %p720_p12 = scmp.ge.s32.totalorder %s31_s25, 2  ;;  %s484_s30 = scalar_lea.hbm %s872_s0, 64 }
  0x15   : > { %p714_p11 = pnand %p401_p10, %p685_p1  ;;  %p485_p13 = scmp.ne.s32.totalorder %s872_s0, %s484_s30 }
  0x16   : > { %s885_s27 = scalar_select %p720_p12, 1, 0 }
  0x17   : > { %p486_p0 = pneg %p714_p11  ;;  %p491_p7 = scmp.lt.u32.totalorder %s484_s30, %s872_s0 }
  0x19   : > { %p487_p3 = pnand %p486_p0, %p485_p13 }
  0x1b   : > { %p488_p5 = pneg %p487_p3 }
  0x1d   : > { %p493_p10 = pnand %p491_p7, %p488_p5 }
  0x1f   : > { %496 = shalt.err (!%p493_p10)
}
  0x20   : > { %s497_s7 = scalar_lea.vmem %s125_s23, 64  ;;  %p505_p1 = scmp.lt.s32.totalorder %s125_s23, %s125_s23 }
  0x21   : > { %p498_p9 = scmp.ne.s32.totalorder %s125_s23, %s497_s7  ;;  %p506_p8 = scmp.lt.s32.totalorder %s497_s7, %s497_s7 }
  0x23   : > { %p500_p6 = pnand %p498_p9, %p486_p0  ;;  %p507_p2 = por %p506_p8, %p505_p1 }
  0x25   : > { %p501_p4 = pneg %p500_p6 }
  0x27   : > { %p508_p12 = pnand %p507_p2, %p501_p4 }
  0x29   : > { %511 = shalt.err (!%p508_p12)
}
  0x2a   : > { %404 = dma.hbm_to_vmem [thread:$0]  (!%p714_p11), %s872_s0, 64, %s125_s23, [#allocation5]  }
  0x2b   : > { %p886_p1 = scmp.ne.s32.totalorder %s885_s27, 0  ;;  %p68_p2 = scmp.ne.s32.totalorder %s616_s11, %s612_s10 }
  0x2c   : > { %p69_p4 = scmp.eq.s32.totalorder %s628_s14, 0  ;;  %p414_p6 = scmp.lt.s32.totalorder %s628_s14, 2 }
  0x2d   : > { %s901_s25 = smov (%p886_p1, %s31_s25), 0  ;;  %p887_p12 = scmp.ne.s32.totalorder %s880_s18, 0 }
  0x2e   : > { %s56_s16 = ssub.s32 %s624_s13, %s901_s25  ;;  %p70_p9 = por %p69_p4, %p68_p2 }
  0x2f   : > { %p59_p8 = scmp.eq.s32.totalorder %s56_s16, 0  ;;  %p752_p13 = por %p887_p12, %p68_p2 }
  0x30   : > { %s135_s24 = sand.u32 1, %s616_s11   ;;  %s392_s27 = sshll.u32 %s624_s13, 7 }
  0x31   : > { %s760_s28 = scalar_select %p59_p8, %s616_s11, %s61_s26  }
  0x32   : > { %s380_s23 = sshll.u32 %s135_s24, 3  ;;  %s766_s3 = scalar_lea.hbm %s873_s1, %s392_s27 }
  0x33   : > { %s139_s18 = scalar_lea.vmem [#allocation7], %s380_s23  ;;  %p770_p11 = pnand %p414_p6, %p70_p9 }
  0x34   : > { %s149_s4 = sshll.u32 %s139_s18, 4  ;;  %s136_s26 = scalar_lea.sflag [#allocation8], %s135_s24  ;;  %s768_s4 = int_to_ptr.vmem [resolvable:$true] %s149_s4 }
  0x35   : > { %s512_s6 = scalar_lea.hbm %s766_s3, 128  ;;  %p514_p3 = pneg %p770_p11 }
  0x36   : > { %p513_p0 = scmp.ne.s32.totalorder %s766_s3, %s512_s6  ;;  %s517_s15 = scalar_lea.hbm %s873_s1, 256 }
  0x37   : > { %p518_p10 = scmp.lt.u32.totalorder %s766_s3, %s873_s1  ;;  %p519_p1 = scmp.lt.u32.totalorder %s517_s15, %s512_s6 }
  0x38   : > { %p515_p5 = pnand %p514_p3, %p513_p0  ;;  %p521_p4 = scmp.lt.u32.totalorder %s512_s6, %s766_s3 }
  0x39   : > { %p520_p2 = por %p519_p1, %p518_p10 }
  0x3a   : > { %p516_p7 = pneg %p515_p5 }
  0x3b   : > { %p522_p6 = por %p521_p4, %p520_p2 }
  0x3d   : > { %p523_p8 = pnand %p522_p6, %p516_p7 }
  0x3f   : > { %526 = shalt.err (!%p523_p8)
}
  0x40   : > { %s527_s24 = scalar_lea.vmem %s768_s4, 128  ;;  %s631_s27 = smov [#allocation7]  }
  0x41   : > { %p528_p9 = scmp.ne.s32.totalorder %s768_s4, %s527_s24  ;;  %s532_s29 = sshll.u32 %s631_s27, 4  ;;  %s533_s29 = int_to_ptr.vmem [resolvable:$false] %s532_s29 }
  0x42   : > { %s534_s30 = scalar_lea.vmem %s533_s29, 256  ;;  %p535_p5 = scmp.lt.s32.totalorder %s768_s4, %s533_s29 }
  0x43   : > { %p530_p12 = pnand %p528_p9, %p514_p3  ;;  %p536_p10 = scmp.lt.s32.totalorder %s534_s30, %s527_s24 }
  0x45   : > { %p531_p0 = pneg %p530_p12  ;;  %p537_p1 = por %p536_p10, %p535_p5 }
  0x47   : > { %p538_p2 = pnand %p537_p1, %p531_p0 }
  0x49   : > { %541 = shalt.err (!%p538_p2)
}
  0x4a   : > { %408 = dma.hbm_to_vmem [thread:$0]  (!%p770_p11), %s766_s3, 128, %s768_s4, %s136_s26  }
  0x4b   : > { %p890_p7 = scmp.ne.s32.totalorder %s883_s21, 0 }
  0x4c   : > { %p891_p3 = scmp.ne.s32.totalorder (!%p890_p7), %s879_s17, 0 }
  0x4d   : > { %158 = sbr.rel (%p890_p7) target bundleno = 464 (0x1d0), region = 28 }
  0x54   : > { %595 = dma.done.wait (%p891_p3), [#allocation5], 64  }
  0x55   : > { %597 = vsyncadd (%p891_p3), [#allocation5], 4294967232  ;;  %s806_s18 = sand.u32 1, %s612_s10   ;;  %p892_p4 = scmp.ne.s32.totalorder %s881_s19, 0 }
  0x56   : > { %s385_s6 = sshll.u32 %s806_s18, 3  ;;  %s165_s5 = scalar_lea.sflag [#allocation8], %s806_s18 }
  0x57   : > { %s168_s7 = scalar_lea.vmem [#allocation7], %s385_s6 }
  0x58   : > { %599 = dma.done.wait (%p892_p4), %s165_s5, 128  }
  0x59   : > { %601 = vsyncadd (%p892_p4), %s165_s5, 4294967168  ;;  %vm193_vm0 = vcmask 3072   ;;  %v632_v0 = vmov 0.0   ;;  %vm201_vm1 = vcmask 1043456   ;;  %v196_v1 = vld [vmem:[%s168_s7] sm:$0xff]  ;;  %v633_v9 = vmov -inf  }
  0x5a   : > { %194 = vst.msk [vmem:[#allocation2] sm:$0xf] %vm193_vm0, %v632_v0  ;;  %v199_v2 = vcombine.high %v196_v1, %v196_v1  ;;  %v202_v3 = vsel %vm201_vm1, %v196_v1, 0.0  ;;  %v211_v5 = vsel %vm201_vm1, %v196_v1, -inf  ;;  %195 = vst.msk [vmem:[#allocation3] sm:$0xf] %vm193_vm0, %v633_v9 }
  0x5b   : > { %v634_v10 = vmov 0   ;;  %v221_v20 = vld [vmem:[#allocation4] sm:$0xf]  ;;  %vm231_vm2 = vcmask 27648   ;;  %s389_s17 = sshll.u32 %s620_s12, 4  ;;  %s187_s19 = scalar_lea.vmem [#allocation9], %s806_s18 }
  0x5c   : > { %v203_v4 = vsel %vm201_vm1, %v199_v2, 0.0  ;;  %v212_v6 = vsel %vm201_vm1, %v199_v2, -inf  ;;  %469 = vset.pattern.permute.xlu1 %v634_v10  ;;  %470 = vset.pattern.permute.xlu0 %v634_v10  ;;  %s286_s21 = sshll.u32 %s187_s19, 4  ;;  %vm271_vm3 = vcmask 24576   ;;  %s823_s26 = scalar_lea.hbm %s874_s2, %s389_s17  ;;  %s825_s21 = int_to_ptr.vmem [resolvable:$true] %s286_s21 }
  0x5d   : > { %v204_v7 = vadd.f32 %v203_v4, %v202_v3  ;;  %v213_v8 = vmax.f32 %v211_v5, %v212_v6  ;;  %s274_s8 = scalar_lea.sflag [#allocation6], %s806_s18  ;;  %s542_s15 = scalar_lea.vmem %s825_s21, 16 }
  0x5e   : > { %p543_p11 = scmp.ne.s32.totalorder %s825_s21, %s542_s15  ;;  %s635_s12 = smov [#allocation9]  }
  0x5f   : > { %205 = vadd.xlane.f32.xlu0 %v204_v7  ;;  %s546_s16 = sshll.u32 %s635_s12, 4  ;;  %s547_s16 = int_to_ptr.vmem [resolvable:$false] %s546_s16 }
  0x60   : > { %p544_p6 = pnand %p543_p11, %p752_p13  ;;  %s548_s23 = scalar_lea.vmem %s547_s16, 32 }
  0x61   : > { %v197_v11 = vld [vmem:[#allocation2] sm:$0xf]  ;;  %v210_v14 = vld [vmem:[#allocation3] sm:$0xf]  ;;  %p549_p9 = scmp.lt.s32.totalorder %s825_s21, %s547_s16  ;;  %p550_p12 = scmp.lt.s32.totalorder %s548_s23, %s542_s15 }
  0x62   : > { %p545_p8 = pneg %p544_p6 }
  0x63   : > { %214 = vmax.xlane.f32.xlu0 %v213_v8  ;;  %p551_p0 = por %p550_p12, %p549_p9 }
  0x65   : > { %p552_p5 = pnand %p551_p0, %p545_p8 }
  0xec   : > { %v206_v12 = vpop.xlane.xlu0 %205 }
  0xed   : > { %v207_v13 = vadd.f32 %v206_v12, %v197_v11 }
  0xef   : > { %209 = vst.msk [vmem:[#allocation2] sm:$0xf] %vm193_vm0, %v207_v13 }
  0xf0   : > { %v215_v15 = vpop.xlane.xlu0 %214 }
  0xf1   : > { %v216_v16 = vmax.f32 %v210_v14, %v215_v15 }
  0xf3   : > { %217 = vst.msk [vmem:[#allocation3] sm:$0xf] %vm193_vm0, %v216_v16 }
  0xf6   : > { %v222_v17 = vld [vmem:[#allocation2] sm:$0xf] }
  0xf7   : > { %v223_v18 = vmul.f32 0.00390625, %v222_v17 }
  0xf9   : > { %227 = vperm.xlu1 %469, %v223_v18  }
  0xfa   : > { %v224_v19 = vld [vmem:[#allocation3] sm:$0xf] }
  0xfd   : > { %241 = vperm.xlu1 %469, %v224_v19  }
 0x178   : > { %v228_v21 = vpop.permute.xlu1 %227 }
 0x179   : > { %v230_v22 = vmul.f32 %v228_v21, %v221_v20 }
 0x17b   : > { %v232_v23 = vsel %vm231_vm2, %v230_v22, 0.0 }
 0x17c   : > { %v233_v24 = vrot.slane %v232_v23, 4  ;;  %v242_v25 = vpop.permute.xlu1 %241 }
 0x17d   : > { %v244_v26 = vmul.f32 %v242_v25, %v221_v20 }
 0x17e   : > { %v234_v27 = vadd.f32 %v233_v24, %v232_v23 }
 0x17f   : > { %v245_v28 = vsel %vm231_vm2, %v244_v26, 0.0 }
 0x180   : > { %v235_v29 = vrot.slane %v234_v27, 2  ;;  %v246_v30 = vrot.slane %v245_v28, 4 }
 0x182   : > { %v236_v31 = vadd.f32 %v235_v29, %v234_v27  ;;  %v247_v32 = vadd.f32 %v246_v30, %v245_v28 }
 0x184   : > { %v237_v33 = vrot.slane %v236_v31, 1  ;;  %v248_v34 = vrot.slane %v247_v32, 2 }
 0x186   : > { %v238_v35 = vadd.f32 %v237_v33, %v236_v31  ;;  %v249_v36 = vadd.f32 %v248_v34, %v247_v32 }
 0x188   : > { %v386_v37 = vmul.f32 -1.442695, %v238_v35  ;;  %v250_v38 = vrot.slane %v249_v36, 1 }
 0x18a   : > { %472 = vpow2.f32 %v386_v37  ;;  %v251_v39 = vadd.f32 %v250_v38, %v249_v36 }
 0x18c   : > { %v387_v40 = vmul.f32 -1.442695, %v251_v39 }
 0x18e   : > { %474 = vpow2.f32 %v387_v40 }
 0x194   : > { %v473_v41 = vpop.eup %472 }
 0x195   : > { %v255_v42 = vadd.f32 1.0, %v473_v41 }
 0x197   : > { %476 = vrcp.f32 %v255_v42 }
 0x198   : > { %v475_v43 = vpop.eup %474 }
 0x199   : > { %v261_v44 = vadd.f32 1.0, %v475_v43 }
 0x19b   : > { %478 = vrcp.f32 %v261_v44 }
 0x1a1   : > { %v477_v45 = vpop.eup %476 }
 0x1a5   : > { %v479_v46 = vpop.eup %478 }
 0x1a6   : > { %v264_v47 = vadd.f32 %v479_v46, %v477_v45 }
 0x1a8   : > { %v388_v48 = vmul.f32 -1.442695, %v264_v47 }
 0x1aa   : > { %480 = vpow2.f32 %v388_v48 }
 0x1b4   : > { %v481_v49 = vpop.eup %480 }
 0x1b5   : > { %v268_v50 = vadd.f32 1.0, %v481_v49 }
 0x1b7   : > { %482 = vrcp.f32 %v268_v50 }
 0x1c1   : > { %v483_v51 = vpop.eup %482 }
 0x1c2   : > { %272 = vst.msk [vmem:[%s187_s19] sm:$0x1] %vm271_vm3, %v483_v51 }
 0x1c3   : > { %555 = shalt.err (!%p552_p5)
}
 0x1c4   : > { %s556_s24 = scalar_lea.hbm %s823_s26, 16  ;;  %s560_s30 = scalar_lea.hbm %s874_s2, 32 }
 0x1c5   : > { %p557_p10 = scmp.ne.s32.totalorder %s823_s26, %s556_s24  ;;  %p561_p7 = scmp.lt.u32.totalorder %s823_s26, %s874_s2 }
 0x1c6   : > { %p562_p3 = scmp.lt.u32.totalorder %s560_s30, %s556_s24  ;;  %p564_p11 = scmp.lt.u32.totalorder %s556_s24, %s823_s26 }
 0x1c7   : > { %p558_p1 = pnand %p557_p10, %p752_p13 }
 0x1c8   : > { %p563_p4 = por %p562_p3, %p561_p7 }
 0x1c9   : > { %p559_p2 = pneg %p558_p1 }
 0x1ca   : > { %p565_p6 = por %p564_p11, %p563_p4 }
 0x1cc   : > { %p566_p8 = pnand %p565_p6, %p559_p2 }
 0x1ce   : > { %569 = shalt.err (!%p566_p8)
}
 0x1cf   : > { %399 = dma.vmem_to_hbm [thread:$0]  (%p752_p13), %s825_s21, 16, %s823_s26, %s274_s8  }
 0x1d0 PF: > { %s298_s5 = sand.u32 1, %s608_s9   ;;  %p893_p9 = scmp.ne.s32.totalorder %s882_s20, 0 }
 0x1d1   : > { %p894_p12 = scmp.ge.s32.totalorder %s628_s14, 2  ;;  %s299_s7 = scalar_lea.sflag [#allocation6], %s298_s5 }
 0x1d3   : > { %p410_p0 = pnand %p894_p12, %p893_p9 }
 0x1d5   : > { %603 = dma.done.wait (!%p410_p0), %s299_s7, 16  }
 0x1d6   : > { %605 = vsyncadd (!%p410_p0), %s299_s7, 4294967280  ;;  %s19_s14 = sadd.s32 1, %s628_s14   ;;  %s895_s9 = smov %s612_s10 }
 0x1d7   : > { %p16_p5 = scmp.ge.s32.totalorder %s19_s14, 4   ;;  %s896_s10 = smov %s616_s11 }
 0x1d8   : > { %s897_s11 = smov %s760_s28  ;;  %s898_s12 = smov %s624_s13 }
 0x1d9   : > { %s899_s13 = smov %s901_s25  ;;  %18 = sbr.rel (!%p16_p5) target bundleno = 7 (0x7), region = 86 }
 0x1e0   :  { %303 = vsyncpa [#allocation5], 1 }
 0x1e1   :  { %305 = vsyncpa [#allocation5 + $0x1], 1 }
 0x1e2   :  { %306 = vsyncpa [#allocation8], 1 }
 0x1e3   :  { %308 = vsyncpa [#allocation8 + $0x1], 1 }
 0x1e4   :  { %309 = vsyncpa [#allocation6], 1 }
 0x1e5   :  { %311 = vsyncpa [#allocation6 + $0x1], 1 }

</bundles_post_ra>
